<compile_context>
chip_gen: v5e
topology: v5e:2x2
jax: 0.10.0
libtpu: 0.0.40
codegen_flags: <defaults>
</compile_context>

<pallas_src>
import functools

import jax
import jax.numpy as jnp
from jax.experimental import pallas as pl
from jax.experimental.pallas import tpu as pltpu


# --------------------------------------------------------------------------
# Kernels
# --------------------------------------------------------------------------
def _weighted_fusion_kernel(w_ref, *refs, num_inputs):
    """o = sum_k w[k] * x_k  over one (tb, tn) tile.

    w_ref   : (K,) SMEM scalar-prefetched fusion weights
    refs    : K input VMEM tiles of shape (tb, tn), then the output tile
    """
    x_refs = refs[:num_inputs]
    o_ref = refs[num_inputs]

    # Hoist all SMEM scalar reads before the vector work (scalar slot stays
    # out of the way of the VPU adds).
    ws = [w_ref[k].astype(jnp.float32) for k in range(num_inputs)]

    # Start the accumulator from the first weighted input (saves one
    # vreg-wide add + init per tile).
    acc = ws[0] * x_refs[0][...].astype(jnp.float32)
    for k in range(1, num_inputs):
        acc = acc + ws[k] * x_refs[k][...].astype(jnp.float32)
    o_ref[...] = acc.astype(o_ref.dtype)


def _sum_fusion_kernel(*refs, num_inputs):
    """o = sum_k x_k  over one (tb, tn) tile (parameter-free path)."""
    x_refs = refs[:num_inputs]
    o_ref = refs[num_inputs]

    acc = x_refs[0][...].astype(jnp.float32)
    for k in range(1, num_inputs):
        acc = acc + x_refs[k][...].astype(jnp.float32)
    o_ref[...] = acc.astype(o_ref.dtype)


# --------------------------------------------------------------------------
# Tiling helper
# --------------------------------------------------------------------------
def _pick_tiles(B, N, K, itemsize, vmem_budget_bytes=12 * 1024 * 1024):
    """Pick (tb, tn) tiles: lane-dense, multiple of the hw tile, VMEM-bounded.

    Full-dim blocks are used when the dim is not a multiple of the hardware
    tile (always legal).  Budget covers double-buffered K inputs + 1 output,
    sized to be safe on v5e (16 MiB scoped default) and v7x (64 MiB physical).
    """
    # minimum sublane tile per element width (f32:8, bf16:16, int8/fp8:32)
    min_sublane = {4: 8, 2: 16, 1: 32}.get(itemsize, 8)

    # Lane (last) dim: largest multiple of 128 dividing N, capped at 2048.
    if N % 128 == 0:
        tn = 128
        for cand in (2048, 1024, 512, 256, 128):
            if cand <= N and N % cand == 0:
                tn = cand
                break
    else:
        tn = N  # full-dim block

    # Sublane dim: largest multiple of min_sublane dividing B, capped at 512.
    if B % min_sublane == 0:
        tb = min_sublane
        cand = 512
        while cand >= min_sublane:
            if cand <= B and B % cand == 0:
                tb = cand
                break
            cand //= 2
    else:
        tb = B  # full-dim block

    def footprint(tb_, tn_):
        # 2 pipeline buffers x (K inputs + 1 output) x tile bytes
        return 2 * (K + 1) * tb_ * tn_ * itemsize

    # Shrink the sublane dim until the double-buffered working set fits.
    while (
        footprint(tb, tn) > vmem_budget_bytes
        and tb > min_sublane
        and tb % 2 == 0
        and B % (tb // 2) == 0
    ):
        tb //= 2

    return tb, tn, footprint(tb, tn)


# --------------------------------------------------------------------------
# Forward wrapper
# --------------------------------------------------------------------------
def fusion_forward(xs, w=None):
    """Weighted summation fusion of k equal-shaped (B, N) matrices.

    xs : list/tuple of k arrays, each (B, N)
    w  : optional (k,) weight vector (require_parameters=True case)
    """
    K = len(xs)
    assert K >= 1
    B, N = xs[0].shape
    for x in xs:
        assert x.shape == (B, N), "summation fusion requires identical dims"

    out_dtype = jnp.result_type(*[x.dtype for x in xs])
    itemsize = jnp.dtype(out_dtype).itemsize
    tb, tn, needed = _pick_tiles(B, N, K, itemsize)
    grid = (B // tb, N // tn)

    # Scoped-VMEM limit: enough for the pipelined working set with headroom,
    # never above what is safe on v7x's 64 MiB physical VMEM.
    vmem_limit = min(max(2 * needed, 32 * 1024 * 1024), 48 * 1024 * 1024)

    compiler_params = pltpu.CompilerParams(
        dimension_semantics=("parallel", "parallel"),
        vmem_limit_bytes=vmem_limit,
    )
    out_shape = jax.ShapeDtypeStruct((B, N), out_dtype)

    if w is not None:
        w = jnp.asarray(w, dtype=jnp.float32)
        assert w.shape == (K,)
        kernel = functools.partial(_weighted_fusion_kernel, num_inputs=K)
        in_specs = [
            pl.BlockSpec((tb, tn), lambda i, j, w_ref: (i, j)) for _ in range(K)
        ]
        out_spec = pl.BlockSpec((tb, tn), lambda i, j, w_ref: (i, j))
        return pl.pallas_call(
            kernel,
            out_shape=out_shape,
            grid_spec=pltpu.PrefetchScalarGridSpec(
                num_scalar_prefetch=1,  # w lands in SMEM
                grid=grid,
                in_specs=in_specs,
                out_specs=out_spec,
            ),
            compiler_params=compiler_params,
        )(w, *xs)

    # Parameter-free (plain summation) path: no scalar prefetch, no dummy w.
    kernel = functools.partial(_sum_fusion_kernel, num_inputs=K)
    in_specs = [pl.BlockSpec((tb, tn), lambda i, j: (i, j)) for _ in range(K)]
    out_spec = pl.BlockSpec((tb, tn), lambda i, j: (i, j))
    return pl.pallas_call(
        kernel,
        out_shape=out_shape,
        grid=grid,
        in_specs=in_specs,
        out_specs=out_spec,
        compiler_params=compiler_params,
    )(*xs)


# --------------------------------------------------------------------------
# Demo / self-check
# --------------------------------------------------------------------------
if __name__ == "__main__":
    key = jax.random.PRNGKey(0)
    K, B, N = 3, 16, 256          # k fused matrices, each (batch=16, n=256)
    keys = jax.random.split(key, K + 1)

    xs = [jax.random.normal(keys[i], (B, N), dtype=jnp.float32) for i in range(K)]
    # Deterministic "parameter" init for the require_parameters=True case:
    # w_i = 1/K + small deterministic perturbation.
    w = (jnp.ones((K,), jnp.float32) / K
         + 0.01 * jnp.arange(K, dtype=jnp.float32))

    out = fusion_forward(xs, w)
    jax.block_until_ready(out)

    # Pure-JAX reference check (weighted sum over stacked inputs).
    ref = jnp.einsum("k,kbn->bn", w, jnp.stack(xs, 0))
    assert out.shape == (B, N)
    assert jnp.allclose(out, ref, atol=1e-5, rtol=1e-5)

    # Parameter-free (plain summation) path.
    out2 = fusion_forward(xs, None)
    jax.block_until_ready(out2)
    assert jnp.allclose(out2, sum(xs), atol=1e-5, rtol=1e-5)

    # TODO(synk): pre_process/post_process hooks are identity here (no
    # preprocess_functions/postprocess_functions configured); arbitrary
    # user-supplied torch callables have no generic Pallas equivalent.
    print("KERNEL_OK")
</pallas_src>

<mosaic_0001>
module attributes {stable_mosaic.version = 11 : i64} {
  func.func @_weighted_fusion_kernel(%arg0: i32, %arg1: i32, %arg2: memref<3xf32, #tpu.memory_space<smem>>, %arg3: memref<16x256xf32, #tpu.memory_space<vmem>>, %arg4: memref<16x256xf32, #tpu.memory_space<vmem>>, %arg5: memref<16x256xf32, #tpu.memory_space<vmem>>, %arg6: memref<16x256xf32, #tpu.memory_space<vmem>>) attributes {dimension_semantics = [#tpu.dimension_semantics<parallel>, #tpu.dimension_semantics<parallel>], iteration_bounds = array<i64: 1, 1>, scalar_prefetch = 1 : i64, scratch_operands = 0 : i64, tpu.core_type = #tpu.core_type<tc>, window_params = [{transform_indices = @transform_0, window_bounds = array<i64: 16, 256>}, {transform_indices = @transform_1, window_bounds = array<i64: 16, 256>}, {transform_indices = @transform_2, window_bounds = array<i64: 16, 256>}, {transform_indices = @transform_3, window_bounds = array<i64: 16, 256>}]} {
    %c0 = arith.constant 0 : index
    %0 = memref.load %arg2[%c0] : memref<3xf32, #tpu.memory_space<smem>>
    %c1 = arith.constant 1 : index
    %1 = memref.load %arg2[%c1] : memref<3xf32, #tpu.memory_space<smem>>
    %c2 = arith.constant 2 : index
    %2 = memref.load %arg2[%c2] : memref<3xf32, #tpu.memory_space<smem>>
    %c0_0 = arith.constant 0 : index
    %c0_1 = arith.constant 0 : index
    %3 = vector.load %arg3[%c0_0, %c0_1] : memref<16x256xf32, #tpu.memory_space<vmem>>, vector<16x256xf32>
    %4 = vector.broadcast %0 : f32 to vector<16x256xf32>
    %5 = arith.mulf %4, %3 : vector<16x256xf32>
    %c0_2 = arith.constant 0 : index
    %c0_3 = arith.constant 0 : index
    %6 = vector.load %arg4[%c0_2, %c0_3] : memref<16x256xf32, #tpu.memory_space<vmem>>, vector<16x256xf32>
    %7 = vector.broadcast %1 : f32 to vector<16x256xf32>
    %8 = arith.mulf %7, %6 : vector<16x256xf32>
    %9 = arith.addf %5, %8 : vector<16x256xf32>
    %c0_4 = arith.constant 0 : index
    %c0_5 = arith.constant 0 : index
    %10 = vector.load %arg5[%c0_4, %c0_5] : memref<16x256xf32, #tpu.memory_space<vmem>>, vector<16x256xf32>
    %11 = vector.broadcast %2 : f32 to vector<16x256xf32>
    %12 = arith.mulf %11, %10 : vector<16x256xf32>
    %13 = arith.addf %9, %12 : vector<16x256xf32>
    %c0_6 = arith.constant 0 : index
    %c0_7 = arith.constant 0 : index
    %14 = vector.load %arg6[%c0_6, %c0_7] : memref<16x256xf32, #tpu.memory_space<vmem>>, vector<16x256xf32>
    tpu.vector_store %arg6[%c0_6, %c0_7], %13 {strides = array<i32>} : memref<16x256xf32, #tpu.memory_space<vmem>>, vector<16x256xf32>,
    return
  }
  func.func @transform_0(%arg0: i32, %arg1: i32, %arg2: memref<3xf32, #tpu.memory_space<smem>>) -> (i32, i32) {
    %c0_i32 = arith.constant 0 : i32
    return %arg0, %arg1 : i32, i32
  }
  func.func @transform_1(%arg0: i32, %arg1: i32, %arg2: memref<3xf32, #tpu.memory_space<smem>>) -> (i32, i32) {
    %c0_i32 = arith.constant 0 : i32
    return %arg0, %arg1 : i32, i32
  }
  func.func @transform_2(%arg0: i32, %arg1: i32, %arg2: memref<3xf32, #tpu.memory_space<smem>>) -> (i32, i32) {
    %c0_i32 = arith.constant 0 : i32
    return %arg0, %arg1 : i32, i32
  }
  func.func @transform_3(%arg0: i32, %arg1: i32, %arg2: memref<3xf32, #tpu.memory_space<smem>>) -> (i32, i32) {
    %c0_i32 = arith.constant 0 : i32
    return %arg0, %arg1 : i32, i32
  }
}

</mosaic_0001>

<bundles_post_ra>
// kernel: tpu_custom_call.1
= control target key start
LH: loop header
LB: loop body
LE: loop exit
PB: predicated region body
PF: predicated region fallthrough
CT: control target
= control target key end

     0   :  { %s258_s18 = smov [#allocation3]   ;;  %s317_s0 = inlined_call_operand.hbm [shape: f32[3], index: 0, kind: input, shape index: {}]   ;;  %s318_s1 = inlined_call_operand.hbm [shape: f32[16,256], index: 1, kind: input, shape index: {}]   ;;  %s319_s2 = inlined_call_operand.hbm [shape: f32[16,256], index: 2, kind: input, shape index: {}]   ;;  %s320_s3 = inlined_call_operand.hbm [shape: f32[16,256], index: 3, kind: input, shape index: {}]   ;;  %s321_s4 = inlined_call_operand.hbm [shape: f32[16,256], index: 4, kind: output, shape index: {}]  }
   0x1   :  { %s10_s17 = sshll.u32 %s317_s0, 4  ;;  %s11_s17 = int_to_ptr.hbm [resolvable:$true] %s10_s17 }
   0x2   :  { %13 = dma.hbm_to_smem %s11_s17, 16, %s258_s18, [#allocation2] }
   0x3   :  { %250 = dma.done.wait [#allocation2], 16 }
   0x4   :  { %251 = vsyncadd [#allocation2], 4294967280 }
   0x5   :  { %16 = sfence }
   0x6   :  { %17 = vsyncpa [#allocation5], 0 }
   0x7   :  { %18 = vsyncpa [#allocation8], 0 }
   0x8   :  { %19 = vsyncpa [#allocation6], 0  ;;  %s37_s21 = sshll.u32 %s319_s2, 4  ;;  %s259_s22 = smov [#allocation7]   ;;  %s38_s21 = int_to_ptr.hbm [resolvable:$true] %s37_s21 }
   0x9   :  { %s39_s23 = sshll.u32 %s259_s22, 4  ;;  %s24_s0 = sshll.u32 %s318_s1, 4  ;;  %s40_s23 = int_to_ptr.vmem [resolvable:$true] %s39_s23  ;;  %s25_s0 = int_to_ptr.hbm [resolvable:$true] %s24_s0 }
   0xa   :  { %s260_s26 = smov 256   ;;  %s261_s27 = smov 16  }
   0xb   :  { %45 = dma.hbm_to_vmem [thread:$0]  %s38_s21, 512, %s40_s23, [#allocation8], %s260_s26, %s260_s26, %s261_s27  }
   0xc   :  { %s262_s28 = smov [#allocation4]   ;;  %s50_s2 = sshll.u32 %s320_s3, 4  ;;  %s51_s2 = int_to_ptr.hbm [resolvable:$true] %s50_s2 }
   0xd   :  { %s26_s29 = sshll.u32 %s262_s28, 4  ;;  %s263_s1 = smov [#allocation9]   ;;  %s27_s29 = int_to_ptr.vmem [resolvable:$true] %s26_s29 }
   0xe   :  { %32 = dma.hbm_to_vmem [thread:$0]  %s25_s0, 512, %s27_s29, [#allocation5], %s260_s26, %s260_s26, %s261_s27  }
   0xf   :  { %s52_s6 = sshll.u32 %s263_s1, 4  ;;  %s53_s6 = int_to_ptr.vmem [resolvable:$true] %s52_s6 }
  0x10   :  { %58 = dma.hbm_to_vmem [thread:$0]  %s51_s2, 512, %s53_s6, [#allocation8], %s260_s26, %s260_s26, %s261_s27  }
  0x11   :  { %252 = dma.done.wait [#allocation5], 512  }
  0x12   :  { %253 = vsyncadd [#allocation5], 4294966784 }
  0x13   :  { %254 = dma.done.wait [#allocation8], 1024  }
  0x14   :  { %255 = vsyncadd [#allocation8], 4294966272  ;;  %s71_s7 = sld [smem:[#allocation3]]  ;;  %v74_v0 = vld [vmem:[#allocation4] sm:$0xff]  ;;  %v75_v6 = vld [vmem:[#allocation4 + $0x8] sm:$0xff]  ;;  %s264_s9 = smov [#allocation10]  }
  0x15   :  { %s133_s8 = sld [smem:[#allocation3 + $0x1]]  ;;  %v83_v2 = vld [vmem:[#allocation7] sm:$0xff]  ;;  %v84_v7 = vld [vmem:[#allocation7 + $0x8] sm:$0xff]  ;;  %v76_v13 = vld [vmem:[#allocation4 + $0x10] sm:$0xff]  ;;  %s117_s10 = sshll.u32 %s264_s9, 4  ;;  %s118_s10 = int_to_ptr.vmem [resolvable:$true] %s117_s10 }
  0x16   :  { %s134_s3 = sld [smem:[#allocation3 + $0x2]]  ;;  %v96_v3 = vld [vmem:[#allocation9] sm:$0xff]  ;;  %v97_v8 = vld [vmem:[#allocation9 + $0x8] sm:$0xff]  ;;  %v85_v14 = vld [vmem:[#allocation7 + $0x10] sm:$0xff]  ;;  %s119_s13 = sshll.u32 %s321_s4, 4  ;;  %s120_s13 = int_to_ptr.hbm [resolvable:$true] %s119_s13 }
  0x17   :  { %v98_v15 = vld [vmem:[#allocation9 + $0x10] sm:$0xff]  ;;  %v77_v20 = vld [vmem:[#allocation4 + $0x18] sm:$0xff] }
  0x18   :  { %v86_v21 = vld [vmem:[#allocation7 + $0x18] sm:$0xff] }
  0x19   :  { %v99_v22 = vld [vmem:[#allocation9 + $0x18] sm:$0xff] }
  0x1a   :  { %v78_v1 = vstv %s71_s7 }
  0x1b   :  { %v79_v4 = vmul.f32 %v78_v1, %v74_v0  ;;  %v87_v5 = vstv %s133_s8  ;;  %v80_v11 = vmul.f32 %v78_v1, %v75_v6  ;;  %v81_v18 = vmul.f32 %v78_v1, %v76_v13 }
  0x1c   :  { %v88_v9 = vmul.f32 %v87_v5, %v83_v2  ;;  %v100_v10 = vstv %s134_s3  ;;  %v89_v12 = vmul.f32 %v87_v5, %v84_v7  ;;  %v90_v19 = vmul.f32 %v87_v5, %v85_v14 }
  0x1d   :  { %v101_v16 = vmul.f32 %v100_v10, %v96_v3  ;;  %v102_v17 = vmul.f32 %v100_v10, %v97_v8  ;;  %v103_v25 = vmul.f32 %v100_v10, %v98_v15  ;;  %v82_v26 = vmul.f32 %v78_v1, %v77_v20 }
  0x1e   :  { %v92_v23 = vadd.f32 %v88_v9, %v79_v4  ;;  %v93_v24 = vadd.f32 %v89_v12, %v80_v11  ;;  %v94_v27 = vadd.f32 %v90_v19, %v81_v18  ;;  %v91_v28 = vmul.f32 %v87_v5, %v86_v21 }
  0x1f   :  { %v104_v29 = vmul.f32 %v100_v10, %v99_v22 }
  0x20   :  { %v105_v30 = vadd.f32 %v101_v16, %v92_v23  ;;  %v106_v31 = vadd.f32 %v102_v17, %v93_v24  ;;  %v107_v32 = vadd.f32 %v103_v25, %v94_v27  ;;  %v95_v33 = vadd.f32 %v91_v28, %v82_v26 }
  0x22   :  { %109 = vst [vmem:[#allocation10] sm:$0xff] %v105_v30  ;;  %v108_v34 = vadd.f32 %v104_v29, %v95_v33 }
  0x23   :  { %110 = vst [vmem:[#allocation10 + $0x8] sm:$0xff] %v106_v31 }
  0x24   :  { %111 = vst [vmem:[#allocation10 + $0x10] sm:$0xff] %v107_v32 }
  0x25   :  { %112 = vst [vmem:[#allocation10 + $0x18] sm:$0xff] %v108_v34 }
  0x26   :  { %125 = dma.vmem_to_hbm [thread:$0]  %s118_s10, 512, %s120_s13, [#allocation6], %s260_s26, %s260_s26, %s261_s27  }
  0x27   :  { %256 = dma.done.wait [#allocation6], 512  }
  0x28   :  { %257 = vsyncadd [#allocation6], 4294966784 }
  0x29   :  { %130 = vsyncpa [#allocation5], 1 }
  0x2a   :  { %131 = vsyncpa [#allocation8], 1 }
  0x2b   :  { %132 = vsyncpa [#allocation6], 1 }

</bundles_post_ra>
